<compile_context>
chip_gen: v7x
topology: tpu7x:2x2x1
jax: 0.10.0
libtpu: 0.0.40
codegen_flags: <defaults>
</compile_context>

<pallas_src>
import functools

import jax
import jax.numpy as jnp
from jax import lax
from jax.experimental import pallas as pl
from jax.experimental.pallas import tpu as pltpu


def _mha_kernel(x_ref, wq_ref, bq_ref, wk_ref, bk_ref, wv_ref, bv_ref,
                wo_ref, bo_ref, o_ref, k_scr, v_scr, *,
                num_heads: int, tq: int):
    # x_ref: (T, E) one batch element (batch dim squeezed by BlockSpec)
    # o_ref: (tq, E) current query tile of the output
    # k_scr / v_scr: (T, E) bf16 VMEM scratch holding projected K / V
    qi = pl.program_id(1)
    t, e = x_ref.shape
    head_dim = e // num_heads

    # Project K and V once per batch element (first query tile); resident in
    # VMEM scratch for the remaining q tiles of this batch element.
    @pl.when(qi == 0)
    def _():
        x_all = x_ref[...].astype(jnp.bfloat16)
        k = jnp.dot(x_all, wk_ref[...], preferred_element_type=jnp.float32)
        v = jnp.dot(x_all, wv_ref[...], preferred_element_type=jnp.float32)
        k_scr[...] = (k + bk_ref[...]).astype(jnp.bfloat16)
        v_scr[...] = (v + bv_ref[...]).astype(jnp.bfloat16)

    # Query projection for this tile. Wq / bq already carry head_dim**-0.5.
    row0 = pl.multiple_of(qi * tq, tq)
    xq = x_ref[pl.ds(row0, tq), :].astype(jnp.bfloat16)
    q = jnp.dot(xq, wq_ref[...], preferred_element_type=jnp.float32) + bq_ref[...]
    q = q.astype(jnp.bfloat16)

    # Per-head attention; softmax math in f32 (VPU/EUP), matmul operands bf16.
    # TODO(synk): for head_dim < 128 the column slices are not lane-tile
    # aligned; processing head pairs (128-wide slices) would avoid relayouts.
    ctx_heads = []
    for h in range(num_heads):
        sl = slice(h * head_dim, (h + 1) * head_dim)
        qh = q[:, sl]                                  # (tq, Dh) bf16
        kh = k_scr[:, sl]                              # (T,  Dh) bf16
        vh = v_scr[:, sl]                              # (T,  Dh) bf16
        # scores: contract dim 1 of both operands -> no explicit kh.T
        s = lax.dot_general(qh, kh, (((1,), (1,)), ((), ())),
                            preferred_element_type=jnp.float32)   # (tq, T) f32
        s = s - jnp.max(s, axis=-1, keepdims=True)
        p = jnp.exp(s)                                 # f32
        l = jnp.sum(p, axis=-1, keepdims=True)         # (tq, 1) f32
        ctx = jnp.dot(p.astype(jnp.bfloat16), vh,
                      preferred_element_type=jnp.float32)          # (tq, Dh)
        ctx_heads.append(ctx * pl.reciprocal(l, approx=True))

    # One fused output projection over the full E contraction.
    ctx_cat = jnp.concatenate(ctx_heads, axis=-1).astype(jnp.bfloat16)
    out = jnp.dot(ctx_cat, wo_ref[...], preferred_element_type=jnp.float32)
    o_ref[...] = (out + bo_ref[...]).astype(o_ref.dtype)


def prepare_params(params: dict, *, num_heads: int) -> dict:
    """One-time (model-load) weight prep: transpose to (in, out), cast to bf16,
    fold the attention scaling into the query projection. Biases stay f32."""
    E = params["q_w"].shape[0]
    if E % num_heads != 0:
        raise ValueError("embed_dim must be divisible by num_heads")
    scaling = (E // num_heads) ** -0.5
    bf16, f32 = jnp.bfloat16, jnp.float32
    return {
        "wq": (params["q_w"].T * scaling).astype(bf16),
        "bq": (params["q_b"] * scaling).reshape(1, E).astype(f32),
        "wk": params["k_w"].T.astype(bf16),
        "bk": params["k_b"].reshape(1, E).astype(f32),
        "wv": params["v_w"].T.astype(bf16),
        "bv": params["v_b"].reshape(1, E).astype(f32),
        "wo": params["o_w"].T.astype(bf16),
        "bo": params["o_b"].reshape(1, E).astype(f32),
    }


def _pick_q_tile(T: int) -> int:
    for cand in (256, 128):
        if T % cand == 0:
            return cand
    return T  # small / ragged sequences: single query tile


def data2vec_audio_attention(hidden_states: jax.Array,
                             prepared: dict,
                             *,
                             num_heads: int) -> jax.Array:
    """Pallas TPU forward of Data2VecAudioAttention (self-attention path).

    hidden_states: (B, T, E); prepared = prepare_params(pytorch_params).
    """
    B, T, E = hidden_states.shape
    if E % num_heads != 0:
        raise ValueError("embed_dim must be divisible by num_heads")
    tq = _pick_q_tile(T)
    nq = T // tq

    kernel = functools.partial(_mha_kernel, num_heads=num_heads, tq=tq)

    def resident(shape):
        # Full-extent block, constant index map -> stays resident across grid.
        return pl.BlockSpec(shape, lambda b, qi: (0, 0))

    return pl.pallas_call(
        kernel,
        out_shape=jax.ShapeDtypeStruct((B, T, E), hidden_states.dtype),
        grid=(B, nq),
        in_specs=[
            pl.BlockSpec((None, T, E), lambda b, qi: (b, 0, 0)),  # x (full T)
            resident((E, E)), resident((1, E)),                   # q_proj
            resident((E, E)), resident((1, E)),                   # k_proj
            resident((E, E)), resident((1, E)),                   # v_proj
            resident((E, E)), resident((1, E)),                   # out_proj
        ],
        out_specs=pl.BlockSpec((None, tq, E), lambda b, qi: (b, qi, 0)),
        scratch_shapes=[
            pltpu.VMEM((T, E), jnp.bfloat16),   # K (projected, biased)
            pltpu.VMEM((T, E), jnp.bfloat16),   # V (projected, biased)
        ],
        compiler_params=pltpu.CompilerParams(
            # Batch is independent (megacore); q-tile axis reuses K/V scratch
            # computed at qi == 0, so it must stay sequential ("arbitrary").
            dimension_semantics=("parallel", "arbitrary"),
            vmem_limit_bytes=48 * 1024 * 1024,   # fits v7x's 64 MiB/TC
        ),
    )(hidden_states,
      prepared["wq"], prepared["bq"],
      prepared["wk"], prepared["bk"],
      prepared["wv"], prepared["bv"],
      prepared["wo"], prepared["bo"])


if __name__ == "__main__":
    key = jax.random.PRNGKey(0)
    B, T, E, H = 2, 8, 32, 4  # small shapes consistent with the module

    keys = jax.random.split(key, 9)
    s = 0.05
    params = {
        "q_w": jax.random.normal(keys[0], (E, E), jnp.float32) * s,
        "q_b": jax.random.normal(keys[1], (E,), jnp.float32) * s,
        "k_w": jax.random.normal(keys[2], (E, E), jnp.float32) * s,
        "k_b": jax.random.normal(keys[3], (E,), jnp.float32) * s,
        "v_w": jax.random.normal(keys[4], (E, E), jnp.float32) * s,
        "v_b": jax.random.normal(keys[5], (E,), jnp.float32) * s,
        "o_w": jax.random.normal(keys[6], (E, E), jnp.float32) * s,
        "o_b": jax.random.normal(keys[7], (E,), jnp.float32) * s,
    }
    hidden_states = jax.random.normal(keys[8], (B, T, E), jnp.float32)

    prepared = prepare_params(params, num_heads=H)
    out = data2vec_audio_attention(hidden_states, prepared, num_heads=H)
    out = jax.block_until_ready(out)

    # Pure-JAX f32 reference mirroring the PyTorch forward (eval, no mask).
    def ref_forward(x):
        hd = E // H
        q = (x @ params["q_w"].T + params["q_b"]) * (hd ** -0.5)
        k = x @ params["k_w"].T + params["k_b"]
        v = x @ params["v_w"].T + params["v_b"]
        q = q.reshape(B, T, H, hd).transpose(0, 2, 1, 3)
        k = k.reshape(B, T, H, hd).transpose(0, 2, 1, 3)
        v = v.reshape(B, T, H, hd).transpose(0, 2, 1, 3)
        w = jax.nn.softmax(jnp.einsum("bhqd,bhkd->bhqk", q, k), axis=-1)
        ctx = jnp.einsum("bhqk,bhkd->bhqd", w, v)
        ctx = ctx.transpose(0, 2, 1, 3).reshape(B, T, E)
        return ctx @ params["o_w"].T + params["o_b"]

    ref = ref_forward(hidden_states)
    assert out.shape == (B, T, E), out.shape
    # bf16 matmul operands (f32 accumulation) => slightly looser tolerance
    # against the pure-f32 reference.
    max_err = float(jnp.max(jnp.abs(out - ref)))
    assert jnp.allclose(out, ref, atol=1e-2, rtol=1e-2), max_err

    print("KERNEL_OK")
</pallas_src>

<mosaic_0001>
module attributes {stable_mosaic.version = 11 : i64} {
  func.func @_mha_kernel(%arg0: i32, %arg1: i32, %arg2: memref<1x8x32xf32, #tpu.memory_space<vmem>>, %arg3: memref<32x32xbf16, #tpu.memory_space<vmem>>, %arg4: memref<1x32xf32, #tpu.memory_space<vmem>>, %arg5: memref<32x32xbf16, #tpu.memory_space<vmem>>, %arg6: memref<1x32xf32, #tpu.memory_space<vmem>>, %arg7: memref<32x32xbf16, #tpu.memory_space<vmem>>, %arg8: memref<1x32xf32, #tpu.memory_space<vmem>>, %arg9: memref<32x32xbf16, #tpu.memory_space<vmem>>, %arg10: memref<1x32xf32, #tpu.memory_space<vmem>>, %arg11: memref<1x8x32xf32, #tpu.memory_space<vmem>>, %arg12: memref<8x32xbf16, #tpu.memory_space<vmem>>, %arg13: memref<8x32xbf16, #tpu.memory_space<vmem>>) attributes {dimension_semantics = [#tpu.dimension_semantics<parallel>, #tpu.dimension_semantics<arbitrary>], iteration_bounds = array<i64: 2, 1>, scalar_prefetch = 0 : i64, scratch_operands = 2 : i64, tpu.core_type = #tpu.core_type<tc>, window_params = [{transform_indices = @transform_0, window_bounds = array<i64: 1, 8, 32>}, {pipeline_mode = #tpu.pipeline_mode<synchronous>, transform_indices = @transform_1, window_bounds = array<i64: 32, 32>}, {pipeline_mode = #tpu.pipeline_mode<synchronous>, transform_indices = @transform_2, window_bounds = array<i64: 1, 32>}, {pipeline_mode = #tpu.pipeline_mode<synchronous>, transform_indices = @transform_3, window_bounds = array<i64: 32, 32>}, {pipeline_mode = #tpu.pipeline_mode<synchronous>, transform_indices = @transform_4, window_bounds = array<i64: 1, 32>}, {pipeline_mode = #tpu.pipeline_mode<synchronous>, transform_indices = @transform_5, window_bounds = array<i64: 32, 32>}, {pipeline_mode = #tpu.pipeline_mode<synchronous>, transform_indices = @transform_6, window_bounds = array<i64: 1, 32>}, {pipeline_mode = #tpu.pipeline_mode<synchronous>, transform_indices = @transform_7, window_bounds = array<i64: 32, 32>}, {pipeline_mode = #tpu.pipeline_mode<synchronous>, transform_indices = @transform_8, window_bounds = array<i64: 1, 32>}, {transform_indices = @transform_9, window_bounds = array<i64: 1, 8, 32>}]} {
    %c0_i32 = arith.constant 0 : i32
    %0 = arith.cmpi eq, %arg1, %c0_i32 : i32
    %1 = arith.extui %0 : i1 to i32
    %c0_i32_0 = arith.constant 0 : i32
    %2 = arith.cmpi ne, %1, %c0_i32_0 : i32
    scf.if %2 {
      %c0_43 = arith.constant 0 : index
      %c0_44 = arith.constant 0 : index
      %c0_45 = arith.constant 0 : index
      %89 = vector.load %arg2[%c0_43, %c0_44, %c0_45] : memref<1x8x32xf32, #tpu.memory_space<vmem>>, vector<1x8x32xf32>
      %90 = vector.shape_cast %89 : vector<1x8x32xf32> to vector<8x32xf32>
      %91 = arith.truncf %90 : vector<8x32xf32> to vector<8x32xbf16>
      %c0_46 = arith.constant 0 : index
      %c0_47 = arith.constant 0 : index
      %92 = vector.load %arg5[%c0_46, %c0_47] : memref<32x32xbf16, #tpu.memory_space<vmem>>, vector<32x32xbf16>
      %cst_48 = arith.constant dense<0.000000e+00> : vector<8x32xf32>
      %93 = tpu.matmul %91, %92, %cst_48 {dimension_numbers = #tpu.dot_dimension_numbers<[1], [0], [0], [1], [0, 0, 1, 1], [], []>} : vector<8x32xbf16>, vector<32x32xbf16>, vector<8x32xf32> -> vector<8x32xf32>
      %c0_49 = arith.constant 0 : index
      %c0_50 = arith.constant 0 : index
      %94 = vector.load %arg7[%c0_49, %c0_50] : memref<32x32xbf16, #tpu.memory_space<vmem>>, vector<32x32xbf16>
      %cst_51 = arith.constant dense<0.000000e+00> : vector<8x32xf32>
      %95 = tpu.matmul %91, %94, %cst_51 {dimension_numbers = #tpu.dot_dimension_numbers<[1], [0], [0], [1], [0, 0, 1, 1], [], []>} : vector<8x32xbf16>, vector<32x32xbf16>, vector<8x32xf32> -> vector<8x32xf32>
      %c0_52 = arith.constant 0 : index
      %c0_53 = arith.constant 0 : index
      %96 = vector.load %arg6[%c0_52, %c0_53] : memref<1x32xf32, #tpu.memory_space<vmem>>, vector<1x32xf32>
      %97 = vector.broadcast %96 : vector<1x32xf32> to vector<8x32xf32>
      %98 = arith.addf %93, %97 : vector<8x32xf32>
      %99 = arith.truncf %98 : vector<8x32xf32> to vector<8x32xbf16>
      %c0_54 = arith.constant 0 : index
      %c0_55 = arith.constant 0 : index
      %100 = vector.load %arg12[%c0_54, %c0_55] : memref<8x32xbf16, #tpu.memory_space<vmem>>, vector<8x32xbf16>
      tpu.vector_store %arg12[%c0_54, %c0_55], %99 {strides = array<i32>} : memref<8x32xbf16, #tpu.memory_space<vmem>>, vector<8x32xbf16>,
      %c0_56 = arith.constant 0 : index
      %c0_57 = arith.constant 0 : index
      %101 = vector.load %arg8[%c0_56, %c0_57] : memref<1x32xf32, #tpu.memory_space<vmem>>, vector<1x32xf32>
      %102 = vector.broadcast %101 : vector<1x32xf32> to vector<8x32xf32>
      %103 = arith.addf %95, %102 : vector<8x32xf32>
      %104 = arith.truncf %103 : vector<8x32xf32> to vector<8x32xbf16>
      %c0_58 = arith.constant 0 : index
      %c0_59 = arith.constant 0 : index
      %105 = vector.load %arg13[%c0_58, %c0_59] : memref<8x32xbf16, #tpu.memory_space<vmem>>, vector<8x32xbf16>
      tpu.vector_store %arg13[%c0_58, %c0_59], %104 {strides = array<i32>} : memref<8x32xbf16, #tpu.memory_space<vmem>>, vector<8x32xbf16>,
    } else {
    }
    %c8_i32 = arith.constant 8 : i32
    %3 = arith.muli %arg1, %c8_i32 : i32
    %4 = tpu.assume_multiple %3, 8 : i32
    %c0 = arith.constant 0 : index
    %5 = arith.index_cast %4 : i32 to index
    %c0_1 = arith.constant 0 : index
    %6 = vector.load %arg2[%c0, %5, %c0_1] : memref<1x8x32xf32, #tpu.memory_space<vmem>>, vector<1x8x32xf32>
    %7 = vector.shape_cast %6 : vector<1x8x32xf32> to vector<8x32xf32>
    %8 = arith.truncf %7 : vector<8x32xf32> to vector<8x32xbf16>
    %c0_2 = arith.constant 0 : index
    %c0_3 = arith.constant 0 : index
    %9 = vector.load %arg3[%c0_2, %c0_3] : memref<32x32xbf16, #tpu.memory_space<vmem>>, vector<32x32xbf16>
    %cst = arith.constant dense<0.000000e+00> : vector<8x32xf32>
    %10 = tpu.matmul %8, %9, %cst {dimension_numbers = #tpu.dot_dimension_numbers<[1], [0], [0], [1], [0, 0, 1, 1], [], []>} : vector<8x32xbf16>, vector<32x32xbf16>, vector<8x32xf32> -> vector<8x32xf32>
    %c0_4 = arith.constant 0 : index
    %c0_5 = arith.constant 0 : index
    %11 = vector.load %arg4[%c0_4, %c0_5] : memref<1x32xf32, #tpu.memory_space<vmem>>, vector<1x32xf32>
    %12 = vector.broadcast %11 : vector<1x32xf32> to vector<8x32xf32>
    %13 = arith.addf %10, %12 : vector<8x32xf32>
    %14 = arith.truncf %13 : vector<8x32xf32> to vector<8x32xbf16>
    %15 = vector.extract_strided_slice %14 {offsets = [0, 0], sizes = [8, 8], strides = [1, 1]} : vector<8x32xbf16> to vector<8x8xbf16>
    %c0_6 = arith.constant 0 : index
    %c0_7 = arith.constant 0 : index
    %16 = vector.load %arg12[%c0_6, %c0_7] : memref<8x32xbf16, #tpu.memory_space<vmem>>, vector<8x8xbf16>
    %c0_8 = arith.constant 0 : index
    %c0_9 = arith.constant 0 : index
    %17 = vector.load %arg13[%c0_8, %c0_9] : memref<8x32xbf16, #tpu.memory_space<vmem>>, vector<8x8xbf16>
    %cst_10 = arith.constant dense<0.000000e+00> : vector<8x8xf32>
    %18 = tpu.matmul %15, %16, %cst_10 {dimension_numbers = #tpu.dot_dimension_numbers<[1], [1], [0], [0], [0, 0, 1, 0], [], []>} : vector<8x8xbf16>, vector<8x8xbf16>, vector<8x8xf32> -> vector<8x8xf32>
    %cst_11 = arith.constant dense<0xFF800000> : vector<8xf32>
    %19 = vector.multi_reduction <maximumf>, %18, %cst_11 [1] : vector<8x8xf32> to vector<8xf32>
    %20 = vector.shape_cast %19 : vector<8xf32> to vector<8x1xf32>
    %21 = vector.broadcast %20 : vector<8x1xf32> to vector<8x8xf32>
    %22 = arith.subf %18, %21 : vector<8x8xf32>
    %23 = math.exp %22 : vector<8x8xf32>
    %cst_12 = arith.constant dense<0.000000e+00> : vector<8xf32>
    %24 = vector.multi_reduction <add>, %23, %cst_12 [1] : vector<8x8xf32> to vector<8xf32>
    %25 = vector.shape_cast %24 : vector<8xf32> to vector<8x1xf32>
    %26 = arith.truncf %23 : vector<8x8xf32> to vector<8x8xbf16>
    %cst_13 = arith.constant dense<0.000000e+00> : vector<8x8xf32>
    %27 = tpu.matmul %26, %17, %cst_13 {dimension_numbers = #tpu.dot_dimension_numbers<[1], [0], [0], [1], [0, 0, 1, 1], [], []>} : vector<8x8xbf16>, vector<8x8xbf16>, vector<8x8xf32> -> vector<8x8xf32>
    %28 = tpu.reciprocal %25 {approx = true} : vector<8x1xf32> -> vector<8x1xf32>
    %29 = vector.broadcast %28 : vector<8x1xf32> to vector<8x8xf32>
    %30 = arith.mulf %27, %29 : vector<8x8xf32>
    %31 = vector.extract_strided_slice %14 {offsets = [0, 8], sizes = [8, 8], strides = [1, 1]} : vector<8x32xbf16> to vector<8x8xbf16>
    %c0_14 = arith.constant 0 : index
    %c8 = arith.constant 8 : index
    %32 = vector.load %arg12[%c0_14, %c8] : memref<8x32xbf16, #tpu.memory_space<vmem>>, vector<8x8xbf16>
    %c0_15 = arith.constant 0 : index
    %c8_16 = arith.constant 8 : index
    %33 = vector.load %arg13[%c0_15, %c8_16] : memref<8x32xbf16, #tpu.memory_space<vmem>>, vector<8x8xbf16>
    %cst_17 = arith.constant dense<0.000000e+00> : vector<8x8xf32>
    %34 = tpu.matmul %31, %32, %cst_17 {dimension_numbers = #tpu.dot_dimension_numbers<[1], [1], [0], [0], [0, 0, 1, 0], [], []>} : vector<8x8xbf16>, vector<8x8xbf16>, vector<8x8xf32> -> vector<8x8xf32>
    %cst_18 = arith.constant dense<0xFF800000> : vector<8xf32>
    %35 = vector.multi_reduction <maximumf>, %34, %cst_18 [1] : vector<8x8xf32> to vector<8xf32>
    %36 = vector.shape_cast %35 : vector<8xf32> to vector<8x1xf32>
    %37 = vector.broadcast %36 : vector<8x1xf32> to vector<8x8xf32>
    %38 = arith.subf %34, %37 : vector<8x8xf32>
    %39 = math.exp %38 : vector<8x8xf32>
    %cst_19 = arith.constant dense<0.000000e+00> : vector<8xf32>
    %40 = vector.multi_reduction <add>, %39, %cst_19 [1] : vector<8x8xf32> to vector<8xf32>
    %41 = vector.shape_cast %40 : vector<8xf32> to vector<8x1xf32>
    %42 = arith.truncf %39 : vector<8x8xf32> to vector<8x8xbf16>
    %cst_20 = arith.constant dense<0.000000e+00> : vector<8x8xf32>
    %43 = tpu.matmul %42, %33, %cst_20 {dimension_numbers = #tpu.dot_dimension_numbers<[1], [0], [0], [1], [0, 0, 1, 1], [], []>} : vector<8x8xbf16>, vector<8x8xbf16>, vector<8x8xf32> -> vector<8x8xf32>
    %44 = tpu.reciprocal %41 {approx = true} : vector<8x1xf32> -> vector<8x1xf32>
    %45 = vector.broadcast %44 : vector<8x1xf32> to vector<8x8xf32>
    %46 = arith.mulf %43, %45 : vector<8x8xf32>
    %47 = vector.extract_strided_slice %14 {offsets = [0, 16], sizes = [8, 8], strides = [1, 1]} : vector<8x32xbf16> to vector<8x8xbf16>
    %c0_21 = arith.constant 0 : index
    %c16 = arith.constant 16 : index
    %48 = vector.load %arg12[%c0_21, %c16] : memref<8x32xbf16, #tpu.memory_space<vmem>>, vector<8x8xbf16>
    %c0_22 = arith.constant 0 : index
    %c16_23 = arith.constant 16 : index
    %49 = vector.load %arg13[%c0_22, %c16_23] : memref<8x32xbf16, #tpu.memory_space<vmem>>, vector<8x8xbf16>
    %cst_24 = arith.constant dense<0.000000e+00> : vector<8x8xf32>
    %50 = tpu.matmul %47, %48, %cst_24 {dimension_numbers = #tpu.dot_dimension_numbers<[1], [1], [0], [0], [0, 0, 1, 0], [], []>} : vector<8x8xbf16>, vector<8x8xbf16>, vector<8x8xf32> -> vector<8x8xf32>
    %cst_25 = arith.constant dense<0xFF800000> : vector<8xf32>
    %51 = vector.multi_reduction <maximumf>, %50, %cst_25 [1] : vector<8x8xf32> to vector<8xf32>
    %52 = vector.shape_cast %51 : vector<8xf32> to vector<8x1xf32>
    %53 = vector.broadcast %52 : vector<8x1xf32> to vector<8x8xf32>
    %54 = arith.subf %50, %53 : vector<8x8xf32>
    %55 = math.exp %54 : vector<8x8xf32>
    %cst_26 = arith.constant dense<0.000000e+00> : vector<8xf32>
    %56 = vector.multi_reduction <add>, %55, %cst_26 [1] : vector<8x8xf32> to vector<8xf32>
    %57 = vector.shape_cast %56 : vector<8xf32> to vector<8x1xf32>
    %58 = arith.truncf %55 : vector<8x8xf32> to vector<8x8xbf16>
    %cst_27 = arith.constant dense<0.000000e+00> : vector<8x8xf32>
    %59 = tpu.matmul %58, %49, %cst_27 {dimension_numbers = #tpu.dot_dimension_numbers<[1], [0], [0], [1], [0, 0, 1, 1], [], []>} : vector<8x8xbf16>, vector<8x8xbf16>, vector<8x8xf32> -> vector<8x8xf32>
    %60 = tpu.reciprocal %57 {approx = true} : vector<8x1xf32> -> vector<8x1xf32>
    %61 = vector.broadcast %60 : vector<8x1xf32> to vector<8x8xf32>
    %62 = arith.mulf %59, %61 : vector<8x8xf32>
    %63 = vector.extract_strided_slice %14 {offsets = [0, 24], sizes = [8, 8], strides = [1, 1]} : vector<8x32xbf16> to vector<8x8xbf16>
    %c0_28 = arith.constant 0 : index
    %c24 = arith.constant 24 : index
    %64 = vector.load %arg12[%c0_28, %c24] : memref<8x32xbf16, #tpu.memory_space<vmem>>, vector<8x8xbf16>
    %c0_29 = arith.constant 0 : index
    %c24_30 = arith.constant 24 : index
    %65 = vector.load %arg13[%c0_29, %c24_30] : memref<8x32xbf16, #tpu.memory_space<vmem>>, vector<8x8xbf16>
    %cst_31 = arith.constant dense<0.000000e+00> : vector<8x8xf32>
    %66 = tpu.matmul %63, %64, %cst_31 {dimension_numbers = #tpu.dot_dimension_numbers<[1], [1], [0], [0], [0, 0, 1, 0], [], []>} : vector<8x8xbf16>, vector<8x8xbf16>, vector<8x8xf32> -> vector<8x8xf32>
    %cst_32 = arith.constant dense<0xFF800000> : vector<8xf32>
    %67 = vector.multi_reduction <maximumf>, %66, %cst_32 [1] : vector<8x8xf32> to vector<8xf32>
    %68 = vector.shape_cast %67 : vector<8xf32> to vector<8x1xf32>
    %69 = vector.broadcast %68 : vector<8x1xf32> to vector<8x8xf32>
    %70 = arith.subf %66, %69 : vector<8x8xf32>
    %71 = math.exp %70 : vector<8x8xf32>
    %cst_33 = arith.constant dense<0.000000e+00> : vector<8xf32>
    %72 = vector.multi_reduction <add>, %71, %cst_33 [1] : vector<8x8xf32> to vector<8xf32>
    %73 = vector.shape_cast %72 : vector<8xf32> to vector<8x1xf32>
    %74 = arith.truncf %71 : vector<8x8xf32> to vector<8x8xbf16>
    %cst_34 = arith.constant dense<0.000000e+00> : vector<8x8xf32>
    %75 = tpu.matmul %74, %65, %cst_34 {dimension_numbers = #tpu.dot_dimension_numbers<[1], [0], [0], [1], [0, 0, 1, 1], [], []>} : vector<8x8xbf16>, vector<8x8xbf16>, vector<8x8xf32> -> vector<8x8xf32>
    %76 = tpu.reciprocal %73 {approx = true} : vector<8x1xf32> -> vector<8x1xf32>
    %77 = vector.broadcast %76 : vector<8x1xf32> to vector<8x8xf32>
    %78 = arith.mulf %75, %77 : vector<8x8xf32>
    %79 = tpu.concatenate %30, %46, %62, %78 in 1 : vector<8x8xf32>, vector<8x8xf32>, vector<8x8xf32>, vector<8x8xf32> -> vector<8x32xf32>
    %80 = arith.truncf %79 : vector<8x32xf32> to vector<8x32xbf16>
    %c0_35 = arith.constant 0 : index
    %c0_36 = arith.constant 0 : index
    %81 = vector.load %arg9[%c0_35, %c0_36] : memref<32x32xbf16, #tpu.memory_space<vmem>>, vector<32x32xbf16>
    %cst_37 = arith.constant dense<0.000000e+00> : vector<8x32xf32>
    %82 = tpu.matmul %80, %81, %cst_37 {dimension_numbers = #tpu.dot_dimension_numbers<[1], [0], [0], [1], [0, 0, 1, 1], [], []>} : vector<8x32xbf16>, vector<32x32xbf16>, vector<8x32xf32> -> vector<8x32xf32>
    %c0_38 = arith.constant 0 : index
    %c0_39 = arith.constant 0 : index
    %83 = vector.load %arg10[%c0_38, %c0_39] : memref<1x32xf32, #tpu.memory_space<vmem>>, vector<1x32xf32>
    %84 = vector.broadcast %83 : vector<1x32xf32> to vector<8x32xf32>
    %85 = arith.addf %82, %84 : vector<8x32xf32>
    %c0_40 = arith.constant 0 : index
    %c0_41 = arith.constant 0 : index
    %c0_42 = arith.constant 0 : index
    %86 = vector.load %arg11[%c0_40, %c0_41, %c0_42] : memref<1x8x32xf32, #tpu.memory_space<vmem>>, vector<1x8x32xf32>
    %87 = vector.shape_cast %86 : vector<1x8x32xf32> to vector<8x32xf32>
    %88 = vector.shape_cast %85 : vector<8x32xf32> to vector<1x8x32xf32>
    tpu.vector_store %arg11[%c0_40, %c0_41, %c0_42], %88 {strides = array<i32>} : memref<1x8x32xf32, #tpu.memory_space<vmem>>, vector<1x8x32xf32>,
    return
  }
  func.func @transform_0(%arg0: i32, %arg1: i32) -> (i32, i32, i32) {
    %c0_i32 = arith.constant 0 : i32
    %c0_i32_0 = arith.constant 0 : i32
    %c0_i32_1 = arith.constant 0 : i32
    return %arg0, %c0_i32, %c0_i32_0 : i32, i32, i32
  }
  func.func @transform_1(%arg0: i32, %arg1: i32) -> (i32, i32) {
    %c0_i32 = arith.constant 0 : i32
    %c0_i32_0 = arith.constant 0 : i32
    %c0_i32_1 = arith.constant 0 : i32
    return %c0_i32, %c0_i32_0 : i32, i32
  }
  func.func @transform_2(%arg0: i32, %arg1: i32) -> (i32, i32) {
    %c0_i32 = arith.constant 0 : i32
    %c0_i32_0 = arith.constant 0 : i32
    %c0_i32_1 = arith.constant 0 : i32
    return %c0_i32, %c0_i32_0 : i32, i32
  }
  func.func @transform_3(%arg0: i32, %arg1: i32) -> (i32, i32) {
    %c0_i32 = arith.constant 0 : i32
    %c0_i32_0 = arith.constant 0 : i32
    %c0_i32_1 = arith.constant 0 : i32
    return %c0_i32, %c0_i32_0 : i32, i32
  }
  func.func @transform_4(%arg0: i32, %arg1: i32) -> (i32, i32) {
    %c0_i32 = arith.constant 0 : i32
    %c0_i32_0 = arith.constant 0 : i32
    %c0_i32_1 = arith.constant 0 : i32
    return %c0_i32, %c0_i32_0 : i32, i32
  }
  func.func @transform_5(%arg0: i32, %arg1: i32) -> (i32, i32) {
    %c0_i32 = arith.constant 0 : i32
    %c0_i32_0 = arith.constant 0 : i32
    %c0_i32_1 = arith.constant 0 : i32
    return %c0_i32, %c0_i32_0 : i32, i32
  }
  func.func @transform_6(%arg0: i32, %arg1: i32) -> (i32, i32) {
    %c0_i32 = arith.constant 0 : i32
    %c0_i32_0 = arith.constant 0 : i32
    %c0_i32_1 = arith.constant 0 : i32
    return %c0_i32, %c0_i32_0 : i32, i32
  }
  func.func @transform_7(%arg0: i32, %arg1: i32) -> (i32, i32) {
    %c0_i32 = arith.constant 0 : i32
    %c0_i32_0 = arith.constant 0 : i32
    %c0_i32_1 = arith.constant 0 : i32
    return %c0_i32, %c0_i32_0 : i32, i32
  }
  func.func @transform_8(%arg0: i32, %arg1: i32) -> (i32, i32) {
    %c0_i32 = arith.constant 0 : i32
    %c0_i32_0 = arith.constant 0 : i32
    %c0_i32_1 = arith.constant 0 : i32
    return %c0_i32, %c0_i32_0 : i32, i32
  }
  func.func @transform_9(%arg0: i32, %arg1: i32) -> (i32, i32, i32) {
    %c0_i32 = arith.constant 0 : i32
    %c0_i32_0 = arith.constant 0 : i32
    return %arg0, %arg1, %c0_i32 : i32, i32, i32
  }
}

</mosaic_0001>

<bundles_post_ra>
// kernel: tpu_custom_call.1
= control target key start
LH: loop header
LB: loop body
LE: loop exit
PB: predicated region body
PF: predicated region fallthrough
CT: control target
= control target key end

     0   :  { %s2215_s0 = inlined_call_operand.hbm [shape: f32[2,8,32], index: 0, kind: input, shape index: {}]   ;;  %s2216_s1 = inlined_call_operand.hbm [shape: bf16[32,32], index: 1, kind: input, shape index: {}]   ;;  %s2217_s2 = inlined_call_operand.vmem [shape: f32[1,32], index: 2, kind: input, shape index: {}]   ;;  %s2218_s3 = inlined_call_operand.hbm [shape: bf16[32,32], index: 3, kind: input, shape index: {}]   ;;  %s2219_s4 = inlined_call_operand.vmem [shape: f32[1,32], index: 4, kind: input, shape index: {}]   ;;  %s2220_s5 = inlined_call_operand.vmem [shape: bf16[32,32], index: 5, kind: input, shape index: {}]   ;;  %s2221_s6 = inlined_call_operand.vmem [shape: f32[1,32], index: 6, kind: input, shape index: {}]   ;;  %s2222_s7 = inlined_call_operand.hbm [shape: bf16[32,32], index: 7, kind: input, shape index: {}]   ;;  %s2223_s8 = inlined_call_operand.vmem [shape: f32[1,32], index: 8, kind: input, shape index: {}]   ;;  %s2224_s9 = inlined_call_operand.hbm [shape: f32[2,8,32], index: 9, kind: output, shape index: {}]  }
   0x1   :  { %2232 = sst [smem:[#allocation20_spill]] %s2221_s6 }
   0x2   :  { %2233 = sst [smem:[#allocation21_spill]] %s2223_s8 }
   0x3   :  { %2234 = sst [smem:[#allocation22_spill]] %s2224_s9 }
   0x4   :  { %14 = vsyncpa [#allocation5], 0 }
   0x5   :  { %16 = vsyncpa [#allocation5 + $0x1], 0 }
   0x6   :  { %17 = vsyncpa [#allocation8], 0 }
   0x7   :  { %18 = vsyncpa [#allocation11], 0 }
   0x8   :  { %19 = vsyncpa [#allocation6], 0 }
   0x9   :  { %21 = vsyncpa [#allocation6 + $0x1], 0  ;;  %s1828_s30 = smov 0   ;;  %s1830_s10 = smov 0  }
   0xa   :  { %s1832_s11 = smov 0   ;;  %s1834_s12 = smov 0  }
   0xb   :  { %s1836_s13 = smov 0   ;;  %s1838_s14 = smov 0  }
   0xc LB: > { %2235 = sst [smem:[#allocation17_spill]] %s1741_s30  ;;  %s1275_s15 = sadd.s32 4294967295, %s1761_s14   ;;  %s1761_s14 = sphi %s1838_s14, %s27_s14   ;;  %s1757_s13 = sphi %s1836_s13, %s2263_s13   ;;  %s1753_s12 = sphi %s1834_s12, %s2262_s12   ;;  %s1749_s11 = sphi %s1832_s11, %s2261_s11   ;;  %s1745_s10 = sphi %s1830_s10, %s2260_s10   ;;  %s1741_s30 = sphi %s1828_s30, %s2259_s30  }
   0xd   : > { %2236 = sst [smem:[#allocation18_spill]] %s1753_s12  ;;  %s1276_s16 = sadd.s32 4294967294, %s1761_s14  }
   0xe   : > { %p59_p0 = scmp.ne.s32.totalorder %s1745_s10, %s1741_s30  ;;  %p1862_p1 = scmp.eq.s32.totalorder %s1275_s15, 0 }
   0xf   : > { %p1866_p2 = scmp.eq.s32.totalorder %s1275_s15, 1  ;;  %p259_p3 = scmp.eq.s32.totalorder %s1276_s16, 1 }
  0x10   : > { %s2237_s17 = scalar_select %p1862_p1, 1, 0 }
  0x11   : > { %s2238_s18 = scalar_select %p1866_p2, 1, 0 }
  0x12   : > { %p1872_p4 = por %p1862_p1, %p59_p0  ;;  %p1277_p5 = scmp.ge.s32.totalorder %s1761_s14, 1 }
  0x13   : > { %p1877_p6 = por %p259_p3, %p59_p0  ;;  %p266_p7 = scmp.lt.s32.totalorder %s1761_s14, 3 }
  0x14   : > { %s2239_s19 = scalar_select %p1872_p4, 1, 0 }
  0x15   : > { %s2240_s20 = scalar_select %p1877_p6, 1, 0 }
  0x16   : > { %p1882_p8 = pnand %p1277_p5, %p266_p7  ;;  %s1763_s22 = smov [#allocation7]  }
  0x17   : > { %2241 = sst [smem:[#allocation19_spill]] %s2240_s20  ;;  %s278_s23 = sshll.u32 %s1763_s22, 4  ;;  %s1886_s23 = int_to_ptr.vmem [resolvable:$true] %s278_s23 }
  0x18   : > { %s2242_s21 = scalar_select %p1882_p8, 1, 0 }
  0x19   : > { %p1444_p9 = pneg %p1882_p8  ;;  %s1764_s25 = smov [#allocation9]  }
  0x1a   : > { %s294_s26 = sshll.u32 %s1764_s25, 4  ;;  %s1765_s27 = smov [#allocation10]   ;;  %s1897_s26 = int_to_ptr.vmem [resolvable:$true] %s294_s26 }
  0x1b   : > { %p1893_p11 = pnand %p1444_p9, %p1862_p1  ;;  %s1899_s28 = sshll.u32 %s1765_s27, 4  ;;  %s317_s28 = int_to_ptr.vmem [resolvable:$true] %s1899_s28 }
  0x1c   : > { %s1557_s16 = scalar_lea.hbm %s2216_s1, 256 }
  0x1d   : > { %p1558_p12 = scmp.ne.s32.totalorder %s2216_s1, %s1557_s16  ;;  %p1909_p13 = pneg %p1893_p11 }
  0x1e   : > { %p1564_p5 = scmp.lt.u32.totalorder %s1557_s16, %s2216_s1 }
  0x1f   : > { %p1560_p0 = pnand %p1909_p13, %p1558_p12 }
  0x21   : > { %p1561_p3 = pneg %p1560_p0 }
  0x23   : > { %p1566_p7 = pnand %p1564_p5, %p1561_p3 }
  0x25   : > { %1569 = shalt.err (!%p1566_p7)
}
  0x26   : > { %s1570_s20 = scalar_lea.vmem %s1886_s23, 256  ;;  %p1578_p1 = scmp.lt.s32.totalorder %s1886_s23, %s1886_s23 }
  0x27   : > { %p1571_p9 = scmp.ne.s32.totalorder %s1886_s23, %s1570_s20  ;;  %p1579_p4 = scmp.lt.s32.totalorder %s1570_s20, %s1570_s20 }
  0x29   : > { %p1573_p10 = pnand %p1571_p9, %p1909_p13  ;;  %p1580_p12 = por %p1579_p4, %p1578_p1 }
  0x2b   : > { %p1574_p6 = pneg %p1573_p10 }
  0x2d   : > { %p1581_p0 = pnand %p1580_p12, %p1574_p6 }
  0x2f   : > { %1584 = shalt.err (!%p1581_p0)
}
  0x30   : > { %s1766_s29 = smov 64   ;;  %s1767_s15 = smov 4  }
  0x31   : > { %1447 = dma.hbm_to_vmem [thread:$0]  (!%p1893_p11), %s2216_s1, 256, %s1886_s23, [#allocation8], %s1766_s29, %s1766_s29, %s1767_s15  }
  0x32   : > { %s1585_s20 = scalar_lea.hbm %s2218_s3, 256 }
  0x33   : > { %p1586_p1 = scmp.ne.s32.totalorder %s2218_s3, %s1585_s20  ;;  %p1592_p10 = scmp.lt.u32.totalorder %s1585_s20, %s2218_s3 }
  0x35   : > { %p1588_p4 = pnand %p1586_p1, %p1909_p13 }
  0x37   : > { %p1589_p6 = pneg %p1588_p4 }
  0x39   : > { %p1594_p3 = pnand %p1592_p10, %p1589_p6 }
  0x3b   : > { %1597 = shalt.err (!%p1594_p3)
}
  0x3c   : > { %s1598_s23 = scalar_lea.vmem %s1897_s26, 256  ;;  %p1606_p12 = scmp.lt.s32.totalorder %s1897_s26, %s1897_s26 }
  0x3d   : > { %p1599_p5 = scmp.ne.s32.totalorder %s1897_s26, %s1598_s23  ;;  %p1607_p0 = scmp.lt.s32.totalorder %s1598_s23, %s1598_s23 }
  0x3f   : > { %p1601_p7 = pnand %p1599_p5, %p1909_p13  ;;  %p1608_p1 = por %p1607_p0, %p1606_p12 }
  0x41   : > { %p1602_p9 = pneg %p1601_p7 }
  0x43   : > { %p1609_p4 = pnand %p1608_p1, %p1602_p9 }
  0x45   : > { %1612 = shalt.err (!%p1609_p4)
}
  0x46   : > { %1450 = dma.hbm_to_vmem [thread:$0]  (!%p1893_p11), %s2218_s3, 256, %s1897_s26, [#allocation8], %s1766_s29, %s1766_s29, %s1767_s15  }
  0x47   : > { %s1613_s16 = scalar_lea.hbm %s2222_s7, 256 }
  0x48   : > { %p1614_p6 = scmp.ne.s32.totalorder %s2222_s7, %s1613_s16  ;;  %p1620_p5 = scmp.lt.u32.totalorder %s1613_s16, %s2222_s7 }
  0x4a   : > { %p1616_p10 = pnand %p1614_p6, %p1909_p13 }
  0x4c   : > { %p1617_p3 = pneg %p1616_p10 }
  0x4e   : > { %p1622_p7 = pnand %p1620_p5, %p1617_p3 }
  0x50   : > { %1625 = shalt.err (!%p1622_p7)
}
  0x51   : > { %s1626_s23 = scalar_lea.vmem %s317_s28, 256  ;;  %p1634_p1 = scmp.lt.s32.totalorder %s317_s28, %s317_s28 }
  0x52   : > { %p1627_p9 = scmp.ne.s32.totalorder %s317_s28, %s1626_s23  ;;  %p1635_p4 = scmp.lt.s32.totalorder %s1626_s23, %s1626_s23 }
  0x54   : > { %p1629_p12 = pnand %p1627_p9, %p1909_p13  ;;  %p1636_p8 = por %p1635_p4, %p1634_p1 }
  0x56   : > { %p1630_p0 = pneg %p1629_p12 }
  0x58   : > { %p1637_p2 = pnand %p1636_p8, %p1630_p0 }
  0x5a   : > { %1640 = shalt.err (!%p1637_p2)
}
  0x5b   : > { %1453 = dma.hbm_to_vmem [thread:$0]  (!%p1893_p11), %s2222_s7, 256, %s317_s28, [#allocation11], %s1766_s29, %s1766_s29, %s1767_s15  }
  0x5c   : > { %s46_s30 = sadd.s32 1, %s1749_s11  ;;  %s39_s24 = sadd.s32 1, %s1757_s13 }
  0x5d   : > { %p53_p2 = scmp.ne.s32.totalorder %s1749_s11, %s1745_s10  ;;  %p41_p8 = scmp.ge.s32.totalorder %s39_s24, 2 }
  0x5e   : > { %p54_p13 = scmp.eq.s32.totalorder %s1761_s14, 0  ;;  %p2245_p6 = scmp.ne.s32.totalorder %s2238_s18, 0 }
  0x5f   : > { %p1465_p3 = scmp.lt.s32.totalorder %s1761_s14, 2  ;;  %s2265_s24 = smov (%p41_p8, %s39_s24), 0 }
  0x60   : > { %p1988_p10 = por %p2245_p6, %p53_p2  ;;  %p55_p5 = por %p54_p13, %p53_p2 }
  0x61   : > { %s333_s9 = sand.u32 1, %s1749_s11   ;;  %s43_s12 = ssub.s32 %s1757_s13, %s2265_s24 }
  0x62   : > { %p44_p7 = scmp.eq.s32.totalorder %s43_s12, 0  ;;  %s1282_s28 = sshll.u32 %s333_s9, 3 }
  0x63   : > { %s1283_s29 = sshll.u32 %s1757_s13, 7  ;;  %s337_s25 = scalar_lea.vmem [#allocation4], %s1282_s28 }
  0x64   : > { %s2000_s15 = scalar_select %p44_p7, %s1749_s11, %s46_s30  }
  0x65   : > { %s2005_s18 = scalar_lea.hbm %s2215_s0, %s1283_s29  ;;  %s344_s27 = sshll.u32 %s337_s25, 4  ;;  %s2007_s27 = int_to_ptr.vmem [resolvable:$true] %s344_s27 }
  0x66   : > { %p2011_p11 = pnand %p1465_p3, %p55_p5  ;;  %s334_s23 = scalar_lea.sflag [#allocation5], %s333_s9 }
  0x67   : > { %s1641_s26 = scalar_lea.hbm %s2005_s18, 128  ;;  %s1646_s12 = scalar_lea.hbm %s2215_s0, 256 }
  0x68   : > { %p1642_p9 = scmp.ne.s32.totalorder %s2005_s18, %s1641_s26  ;;  %p1643_p12 = pneg %p2011_p11 }
  0x69   : > { %p1647_p4 = scmp.lt.u32.totalorder %s2005_s18, %s2215_s0  ;;  %p1648_p2 = scmp.lt.u32.totalorder %s1646_s12, %s1641_s26 }
  0x6a   : > { %p1644_p0 = pnand %p1643_p12, %p1642_p9  ;;  %p1650_p13 = scmp.lt.u32.totalorder %s1641_s26, %s2005_s18 }
  0x6b   : > { %p1649_p8 = por %p1648_p2, %p1647_p4 }
  0x6c   : > { %p1645_p1 = pneg %p1644_p0 }
  0x6d   : > { %p1651_p6 = por %p1650_p13, %p1649_p8 }
  0x6f   : > { %p1652_p3 = pnand %p1651_p6, %p1645_p1 }
  0x71   : > { %1655 = shalt.err (!%p1652_p3)
}
  0x72   : > { %s1656_s9 = scalar_lea.vmem %s2007_s27, 128  ;;  %s1768_s16 = smov [#allocation4]  }
  0x73   : > { %p1657_p5 = scmp.ne.s32.totalorder %s2007_s27, %s1656_s9  ;;  %s1661_s22 = sshll.u32 %s1768_s16, 4  ;;  %s1662_s22 = int_to_ptr.vmem [resolvable:$false] %s1661_s22 }
  0x74   : > { %s1663_s25 = scalar_lea.vmem %s1662_s22, 256  ;;  %p1664_p0 = scmp.lt.s32.totalorder %s2007_s27, %s1662_s22 }
  0x75   : > { %p1659_p7 = pnand %p1657_p5, %p1643_p12  ;;  %p1665_p4 = scmp.lt.s32.totalorder %s1663_s25, %s1656_s9 }
  0x77   : > { %p1660_p9 = pneg %p1659_p7  ;;  %p1666_p2 = por %p1665_p4, %p1664_p0 }
  0x79   : > { %p1667_p8 = pnand %p1666_p2, %p1660_p9 }
  0x7b   : > { %1670 = shalt.err (!%p1667_p8)
}
  0x7c   : > { %1457 = dma.hbm_to_vmem [thread:$0]  (!%p2011_p11), %s2005_s18, 128, %s2007_s27, %s334_s23  }
  0x7d   : > { %p2248_p1 = scmp.ne.s32.totalorder %s2242_s21, 0 }
  0x7e   : > { %s2043_s26 = sand.u32 (!%p2248_p1), 1, %s1745_s10   ;;  %p2249_p12 = scmp.ne.s32.totalorder (!%p2248_p1), %s2239_s19, 0 }
  0x7f   : > { %353 = sbr.rel (%p2248_p1) target bundleno = 1447 (0x5a7), region = 56  ;;  %s1285_s6 = sshll.u32 (!%p2248_p1), %s2043_s26, 3 }
  0x80   : > { %s356_s30 = scalar_lea.sflag (!%p2248_p1), [#allocation5], %s2043_s26  ;;  %s359_s12 = scalar_lea.vmem (!%p2248_p1), [#allocation4], %s1285_s6 }
  0x86   : > { %1724 = dma.done.wait (%p2249_p12), %s356_s30, 128  }
  0x87   : > { %1726 = vsyncadd (%p2249_p12), %s356_s30, 4294967168  ;;  %p2250_p11 = scmp.ne.s32.totalorder %s2237_s17, 0 }
  0x89   : > { %1728 = dma.done.wait (%p2250_p11), [#allocation8], 512  }
  0x8a   : > { %1730 = vsyncadd (%p2250_p11), [#allocation8], 4294966784 }
  0x8b   : > { %1732 = dma.done.wait (%p2250_p11), [#allocation11], 256  }
  0x8c   : > { %1734 = vsyncadd (%p2250_p11), [#allocation11], 4294967040  ;;  %v1769_v0 = vmov 0.0   ;;  %vm1770_vm0 = vmmov 0   ;;  %v1531_v1 = vld [vmem:[#allocation9] sm:$0xff]   ;;  %v1532_v2 = vld [vmem:[#allocation9 + $0x8] sm:$0xff]  }
  0x8d   : > { %1348 = vmatprep.subr.bf16.mxu0 %v1769_v0  ;;  %1352 = vmatprep.mubr.msk.bf16.mxu0 %vm1770_vm0, %v1769_v0  ;;  %v411_v3 = vld [vmem:[%s359_s12] sm:$0xff]  ;;  %vm440_vm1 = vcmask 261120   ;;  %v1533_v4 = vld [vmem:[#allocation7] sm:$0xff]   ;;  %v1534_v6 = vld [vmem:[#allocation7 + $0x8] sm:$0xff]   ;;  %vm485_vm2 = vcmask 257024   ;;  %vm622_vm3 = vcmask 64512  }
  0x8e   : > { %1356 = vmatprep.subr.bf16.mxu1 %v1769_v0  ;;  %1360 = vmatprep.mubr.msk.bf16.mxu1 %vm1770_vm0, %v1769_v0  ;;  %v412_v5 = vpack.c.bf16 %v411_v3, %v411_v3  ;;  %v1535_v7 = vld [vmem:[%s2220_s5] sm:$0xff]   ;;  %v1536_v8 = vld [vmem:[%s2220_s5 + $0x8] sm:$0xff]   ;;  %s1771_s29 = smov 112   ;;  %s1772_s9 = smov 120   ;;  %vm682_vm4 = vcmask 1043456   ;;  %vm1078_vm5 = vcmask 130048  }
  0x8f   : > { %1349 = vmatpush3.bf16.msra.mxu0 %v1531_v1  ;;  %1357 = vmatpush3.bf16.msra.mxu1 %v1535_v7  ;;  %v1290_v9 = vld [vmem:[%s2219_s4] ss:$0 sm:$0xff]  ;;  %s1773_s16 = smov 104   ;;  %s2251_s30 = sld [smem:[#allocation20_spill]]  ;;  %vm1080_vm6 = vcmask 195584  }
  0x90   : > { %1350 = vmatprep.subr.bf16.mxu0 %v1769_v0  ;;  %1358 = vmatprep.subr.bf16.mxu1 %v1769_v0  ;;  %v1298_v16 = vld [vmem:[%s2217_s2] ss:$0 sm:$0xff]  ;;  %s1774_s12 = smov 8   ;;  %s1775_s17 = smov 16  }
  0x91   : > { %s1776_s19 = smov 24   ;;  %s2252_s21 = sld [smem:[#allocation18_spill]] }
  0x92   : > { %s2253_s20 = sld [smem:[#allocation21_spill]]  ;;  %s405_s28 = scalar_lea.vmem [#allocation12], %s1285_s6 }
  0x93   : > { %1351 = vmatpush3.bf16.msra.mxu0 %v1532_v2  ;;  %1359 = vmatpush3.bf16.msra.mxu1 %v1536_v8  ;;  %s2254_s22 = sld [smem:[#allocation22_spill]] }
  0x94   : > { %1364 = vmatprep.subr.bf16.mxu0 %v1769_v0  ;;  %1372 = vmatprep.subr.bf16.mxu1 %v1769_v0 }
  0x95   : > { %v1294_v26 = vld [vmem:[%s2251_s30] ss:$0 sm:$0xff]  ;;  %s1151_s30 = scalar_lea.sflag [#allocation6], %s2043_s26 }
  0x96   : > { %1353 = vmatmul.mubr.msk.bf16.vlgmr.msra.gmra.mrb[0].mxu0 %vm440_vm1, %v412_v5  ;;  %1361 = vmatmul.mubr.msk.bf16.vlgmr.msra.gmra.mrb[0].mxu1 %vm440_vm1, %v412_v5 }
  0x97   : > { %1365 = vmatpush3.bf16.msra.mxu0 %v1533_v4  ;;  %1368 = vmatprep.mubr.msk.bf16.mxu0 %vm1770_vm0, %v1769_v0  ;;  %s1317_s23 = sshll.u32 %s2252_s21, 7 }
  0x98   : > { %1366 = vmatprep.subr.bf16.mxu0 %v1769_v0  ;;  %1374 = vmatprep.mubr.msk.bf16.mxu1 %vm1770_vm0, %v1769_v0 }
  0x99   : > { %s2165_s25 = scalar_lea.hbm %s2254_s22, %s1317_s23 }
  0x9b   : > { %1367 = vmatpush3.bf16.msra.mxu0 %v1534_v6 }
  0x9c   : > { %1378 = vmatprep.subr.bf16.mxu0 %v1769_v0 }
  0x9e   : > { %1369 = vmatmul.mubr.msk.bf16.vlgmr.msra.gmra.mrb[4].mxu0 %vm440_vm1, %v412_v5 }
  0x9f   : > { %1380 = vmatprep.mubr.msk.bf16.mxu0 %vm1770_vm0, %v1769_v0 }
 0x169   : > { %v478_v10 = vpop.f32.mrb[0].mxu0  ;;  %v540_v27 = vpop.f32.mrb[0].mxu1 }
 0x16a   : > { %v479_v11 = vadd.f32 %v1290_v9, %v478_v10  ;;  %v1354_v12 = vpop.f32.mrb[1].mxu0  ;;  %v541_v28 = vadd.f32 %v1294_v26, %v540_v27  ;;  %v1362_v29 = vpop.f32.mrb[1].mxu1 }
 0x16b   : > { %v481_v13 = vpop.f32.mrb[2].mxu0  ;;  %v543_v30 = vpop.f32.mrb[2].mxu1 }
 0x16c   : > { %v484_v14 = vpack.c.bf16 %v479_v11, %v479_v11  ;;  %v1355_v15 = vpop.f32.mrb[3].mxu0  ;;  %v546_v31 = vpack.c.bf16 %v541_v28, %v541_v28  ;;  %v1363_v32 = vpop.f32.mrb[3].mxu1 }
 0x16e   : > { %486 = vst.msk [vmem:[#allocation2] sm:$0xf] %vm485_vm2, %v484_v14  ;;  %547 = vst.msk [vmem:[#allocation3] sm:$0xf] %vm485_vm2, %v546_v31 }
 0x171   : > { %v613_v17 = vpop.f32.mrb[4].mxu0 }
 0x172   : > { %v1370_v18 = vpop.f32.mrb[5].mxu0  ;;  %v614_v20 = vadd.f32 %v1298_v16, %v613_v17 }
 0x173   : > { %v616_v19 = vpop.f32.mrb[6].mxu0 }
 0x174   : > { %v1371_v21 = vpop.f32.mrb[7].mxu0  ;;  %v619_v25 = vpack.c.bf16 %v614_v20, %v614_v20 }
 0x175   : > { %v620_v22 = vld [vmem:[#allocation2] sm:$0xf]  ;;  %v621_v33 = vld [vmem:[#allocation3] sm:$0xf] }
 0x176   : > { %v627_v23 = vsel %vm622_vm3, %v620_v22, 0  ;;  %v1304_v24 = vcombine.low %v620_v22, %v620_v22  ;;  %v684_v34 = vsel %vm682_vm4, %v621_v33, 0  ;;  %v1306_v62 = vcombine.low %v621_v33, %v621_v33 }
 0x177   : > { %1373 = vmatpush3.bf16.xpose.msra.mxu1 %v627_v23  ;;  %1379 = vmatpush3.bf16.msra.mxu0 %v684_v34 }
 0x178   : > { %847 = vrot.lane.b32.xlu1 %v1304_v24, %s1771_s29  ;;  %734 = vrot.lane.b32.xlu0 %v1304_v24, %s1772_s9 }
 0x179   : > { %1384 = vmatprep.subr.bf16.mxu1 %v1769_v0  ;;  %1390 = vmatprep.subr.bf16.mxu0 %v1769_v0 }
 0x17c   : > { %845 = vrot.lane.b32.xlu1 %v619_v25, %s1771_s29  ;;  %729 = vrot.lane.b32.xlu0 %v619_v25, %s1772_s9 }
 0x17e   : > { %1375 = vmatmul.mubr.msk.bf16.vlgmr.msra.gmra.mrb[4].mxu1 %vm622_vm3, %v619_v25 }
 0x17f   : > { %1386 = vmatprep.mubr.msk.bf16.mxu1 %vm1770_vm0, %v1769_v0 }
 0x180   : > { %955 = vrot.lane.b32.xlu1 %v619_v25, %s1773_s16  ;;  %957 = vrot.lane.b32.xlu0 %v1304_v24, %s1773_s16 }
 0x1ea   : > { %v735_v35 = vpop.permute.xlu0 %734  ;;  %v848_v37 = vpop.permute.xlu1 %847 }
 0x1eb   : > { %v740_v36 = vsel %vm622_vm3, %v735_v35, 0  ;;  %v853_v39 = vsel %vm622_vm3, %v848_v37, 0 }
 0x1ec   : > { %1385 = vmatpush3.bf16.xpose.msra.mxu1 %v740_v36 }
 0x1ed   : > { %1396 = vmatprep.subr.bf16.mxu1 %v1769_v0 }
 0x1ee   : > { %v730_v38 = vpop.permute.xlu0 %729  ;;  %v846_v41 = vpop.permute.xlu1 %845 }
 0x1f2   : > { %v958_v40 = vpop.permute.xlu0 %957  ;;  %v956_v43 = vpop.permute.xlu1 %955 }
 0x1f3   : > { %1387 = vmatmul.mubr.msk.bf16.vlgmr.msra.gmra.mrb[8].mxu1 %vm622_vm3, %v730_v38  ;;  %v963_v42 = vsel %vm622_vm3, %v958_v40, 0  ;;  %v1539_v38 = vld [vmem:[#allocation10] sm:$0xff]  }
 0x1f4   : > { %1397 = vmatpush3.bf16.xpose.msra.mxu1 %v853_v39  ;;  %1398 = vmatprep.mubr.msk.bf16.mxu1 %vm1770_vm0, %v1769_v0 }
 0x1f5   : > { %1408 = vmatprep.subr.bf16.mxu1 %v1769_v0 }
 0x1fb   : > { %1399 = vmatmul.mubr.msk.bf16.vlgmr.msra.gmra.mrb[12].mxu1 %vm622_vm3, %v846_v41 }
 0x1fc   : > { %1409 = vmatpush3.bf16.xpose.msra.mxu1 %v963_v42  ;;  %1410 = vmatprep.mubr.msk.bf16.mxu1 %vm1770_vm0, %v1769_v0 }
 0x1fd   : > { %1420 = vmatprep.subr.bf16.mxu1 %v1769_v0 }
 0x203   : > { %1411 = vmatmul.mubr.msk.bf16.vlgmr.msra.gmra.mrb[16].mxu1 %vm622_vm3, %v956_v43 }
 0x204   : > { %1424 = vmatprep.mubr.msk.bf16.mxu1 %vm1770_vm0, %v1769_v0  ;;  %1421 = vmatpush3.bf16.msra.mxu1 %v1539_v38 }
 0x205   : > { %1422 = vmatprep.subr.bf16.mxu1 %v1769_v0 }
 0x251   : > { %v663_v44 = vpop.f32.mrb[4].mxu1 }
 0x252   : > { %v1376_v45 = vpop.f32.mrb[5].mxu1  ;;  %v669_v46 = vsel %vm622_vm3, %v663_v44, -inf }
 0x253   : > { %670 = vmax.xlane.f32.xlu0 %v669_v46  ;;  %v666_v47 = vpop.f32.mrb[6].mxu1  ;;  %v1540_v46 = vld [vmem:[#allocation10 + $0x8] sm:$0xff]  }
 0x254   : > { %v1377_v48 = vpop.f32.mrb[7].mxu1  ;;  %1423 = vmatpush3.bf16.msra.mxu1 %v1540_v46 }
 0x2c6   : > { %v776_v49 = vpop.f32.mrb[8].mxu1 }
 0x2c7   : > { %v1388_v50 = vpop.f32.mrb[9].mxu1  ;;  %v782_v51 = vsel %vm622_vm3, %v776_v49, -inf }
 0x2c8   : > { %783 = vmax.xlane.f32.xlu1 %v782_v51  ;;  %v779_v52 = vpop.f32.mrb[10].mxu1 }
 0x2c9   : > { %v1389_v53 = vpop.f32.mrb[11].mxu1 }
 0x2ce   : > { %v889_v54 = vpop.f32.mrb[12].mxu1 }
 0x2cf   : > { %v1400_v55 = vpop.f32.mrb[13].mxu1  ;;  %v895_v56 = vsel %vm622_vm3, %v889_v54, -inf }
 0x2d0   : > { %896 = vmax.xlane.f32.xlu0 %v895_v56  ;;  %v892_v57 = vpop.f32.mrb[14].mxu1 }
 0x2d1   : > { %v1401_v58 = vpop.f32.mrb[15].mxu1 }
 0x2d6   : > { %v999_v59 = vpop.f32.mrb[16].mxu1 }
 0x2d7   : > { %v1412_v60 = vpop.f32.mrb[17].mxu1  ;;  %v1005_v61 = vsel %vm622_vm3, %v999_v59, -inf }
 0x2d8   : > { %1006 = vmax.xlane.f32.xlu0 %v1005_v61  ;;  %v1002_v63 = vpop.f32.mrb[18].mxu1 }
 0x2d9   : > { %795 = vrot.lane.b32.xlu1 %v1306_v62, %s1772_s9  ;;  %v1413_v1 = vpop.f32.mrb[19].mxu1 }
 0x2dd   : > { %1015 = vrot.lane.b32.xlu1 %v1306_v62, %s1773_s16 }
 0x2e0   : > { %v671_v2 = vpop.xlane.xlu0 %670 }
 0x2e1   : > { %v672_v3 = vsub.f32 %v663_v44, %v671_v2 }
 0x2e3   : > { %v673_v4 = vmul.f32 1.442695, %v672_v3 }
 0x2e5   : > { %1541 = vpow2.f32 %v673_v4 }
 0x2ee   : > { %905 = vrot.lane.b32.xlu0 %v1306_v62, %s1771_s29  ;;  %s1165_s29 = sshll.u32 %s405_s28, 4  ;;  %s2167_s29 = int_to_ptr.vmem [resolvable:$true] %s1165_s29 }
 0x2ef   : > { %v1542_v5 = vpop.eup %1541  ;;  %s1671_s6 = scalar_lea.vmem %s2167_s29, 128 }
 0x2f0   : > { %v678_v6 = vpack.c.bf16 %v1542_v5, %v1542_v5  ;;  %v675_v22 = vsel %vm622_vm3, %v1542_v5, 0.0  ;;  %v1312_v5 = vld [vmem:[%s2253_s20] ss:$0 sm:$0xff]  ;;  %p1672_p13 = scmp.ne.s32.totalorder %s2167_s29, %s1671_s6 }
 0x2f2   : > { %1381 = vmatmul.mubr.msk.bf16.vlgmr.msra.gmra.mrb[8].mxu0 %vm622_vm3, %v678_v6  ;;  %p1673_p6 = pnand %p1672_p13, %p1988_p10 }
 0x2f3   : > { %1392 = vmatprep.mubr.msk.bf16.mxu0 %vm1770_vm0, %v1769_v0 }
 0x2f4   : > { %p1674_p3 = pneg %p1673_p6 }
 0x355   : > { %v784_v7 = vpop.xlane.xlu1 %783 }
 0x356   : > { %v785_v8 = vsub.f32 %v776_v49, %v784_v7 }
 0x358   : > { %v786_v9 = vmul.f32 1.442695, %v785_v8 }
 0x359   : > { %v796_v10 = vpop.permute.xlu1 %795 }
 0x35a   : > { %1543 = vpow2.f32 %v786_v9  ;;  %v801_v11 = vsel %vm682_vm4, %v796_v10, 0 }
 0x35b   : > { %1391 = vmatpush3.bf16.msra.mxu0 %v801_v11 }
 0x35c   : > { %1402 = vmatprep.subr.bf16.mxu0 %v1769_v0 }
 0x35d   : > { %v897_v12 = vpop.xlane.xlu0 %896  ;;  %v1016_v25 = vpop.permute.xlu1 %1015 }
 0x35e   : > { %v898_v13 = vsub.f32 %v889_v54, %v897_v12  ;;  %v1021_v28 = vsel %vm682_vm4, %v1016_v25, 0 }
 0x360   : > { %v899_v14 = vmul.f32 1.442695, %v898_v13 }
 0x362   : > { %1545 = vpow2.f32 %v899_v14 }
 0x364   : > { %v1544_v15 = vpop.eup %1543 }
 0x365   : > { %v1007_v16 = vpop.xlane.xlu0 %1006  ;;  %v788_v17 = vsel %vm622_vm3, %v1544_v15, 0.0  ;;  %v791_v18 = vpack.c.bf16 %v1544_v15, %v1544_v15 }
 0x366   : > { %v1008_v19 = vsub.f32 %v999_v59, %v1007_v16  ;;  %789 = vadd.xlane.f32.xlu1 %v788_v17 }
 0x367   : > { %1393 = vmatmul.mubr.msk.bf16.vlgmr.msra.gmra.mrb[12].mxu0 %vm622_vm3, %v791_v18 }
 0x368   : > { %v1009_v20 = vmul.f32 1.442695, %v1008_v19  ;;  %1404 = vmatprep.mubr.msk.bf16.mxu0 %vm1770_vm0, %v1769_v0 }
 0x369   : > { %v906_v21 = vpop.permute.xlu0 %905 }
 0x36a   : > { %1547 = vpow2.f32 %v1009_v20  ;;  %v911_v23 = vsel %vm682_vm4, %v906_v21, 0  ;;  %676 = vadd.xlane.f32.xlu1 %v675_v22 }
 0x36b   : > { %1403 = vmatpush3.bf16.msra.mxu0 %v911_v23 }
 0x36c   : > { %v1546_v24 = vpop.eup %1545  ;;  %1414 = vmatprep.subr.bf16.mxu0 %v1769_v0 }
 0x36d   : > { %v901_v26 = vsel %vm622_vm3, %v1546_v24, 0.0  ;;  %v904_v27 = vpack.c.bf16 %v1546_v24, %v1546_v24 }
 0x36e   : > { %902 = vadd.xlane.f32.xlu0 %v901_v26 }
 0x36f   : > { %1405 = vmatmul.mubr.msk.bf16.vlgmr.msra.gmra.mrb[16].mxu0 %vm622_vm3, %v904_v27 }
 0x370   : > { %1415 = vmatpush3.bf16.msra.mxu0 %v1021_v28  ;;  %1416 = vmatprep.mubr.msk.bf16.mxu0 %vm1770_vm0, %v1769_v0 }
 0x374   : > { %v1548_v29 = vpop.eup %1547 }
 0x375   : > { %v1011_v30 = vsel %vm622_vm3, %v1548_v29, 0.0  ;;  %v1014_v31 = vpack.c.bf16 %v1548_v29, %v1548_v29 }
 0x376   : > { %1012 = vadd.xlane.f32.xlu0 %v1011_v30 }
 0x377   : > { %1417 = vmatmul.mubr.msk.bf16.vlgmr.msra.gmra.mrb[20].mxu0 %vm622_vm3, %v1014_v31 }
 0x3c5   : > { %v720_v32 = vpop.f32.mrb[8].mxu0 }
 0x3c6   : > { %v1382_v33 = vpop.f32.mrb[9].mxu0 }
 0x3c7   : > { %v723_v34 = vpop.f32.mrb[10].mxu0 }
 0x3c8   : > { %v1383_v35 = vpop.f32.mrb[11].mxu0 }
 0x3f3   : > { %v790_v36 = vpop.xlane.xlu1 %789 }
 0x3f4   : > { %1549 = vrcp.f32 %v790_v36 }
 0x3f7   : > { %v677_v58 = vpop.xlane.xlu1 %676 }
 0x3fb   : > { %v903_v37 = vpop.xlane.xlu0 %902 }
 0x3fc   : > { %1551 = vrcp.f32 %v903_v37 }
 0x3fe   : > { %v1550_v39 = vpop.eup %1549 }
 0x403   : > { %v1013_v44 = vpop.xlane.xlu0 %1012 }
 0x404   : > { %1553 = vrcp.f32 %v1013_v44 }
 0x405   : > { %1555 = vrcp.f32 %v677_v58 }
 0x406   : > { %v1552_v47 = vpop.eup %1551 }
 0x40e   : > { %v1554_v53 = vpop.eup %1553 }
 0x40f   : > { %v1556_v59 = vpop.eup %1555 }
 0x410   : > { %v727_v62 = vmul.f32 %v1556_v59, %v720_v32 }
 0x43a   : > { %v837_v40 = vpop.f32.mrb[12].mxu0 }
 0x43b   : > { %v844_v41 = vmul.f32 %v1550_v39, %v837_v40  ;;  %v1394_v42 = vpop.f32.mrb[13].mxu0 }
 0x43c   : > { %v840_v43 = vpop.f32.mrb[14].mxu0 }
 0x43d   : > { %1066 = vrot.lane.b32.xlu0 %v844_v41, %s1774_s12  ;;  %v1395_v45 = vpop.f32.mrb[15].mxu0  ;;  %s1777_s12 = smov [#allocation12]  }
 0x442   : > { %v947_v48 = vpop.f32.mrb[16].mxu0 }
 0x443   : > { %v954_v49 = vmul.f32 %v1552_v47, %v947_v48  ;;  %v1406_v50 = vpop.f32.mrb[17].mxu0 }
 0x444   : > { %v950_v51 = vpop.f32.mrb[18].mxu0 }
 0x445   : > { %1070 = vrot.lane.b32.xlu1 %v954_v49, %s1775_s17  ;;  %v1407_v52 = vpop.f32.mrb[19].mxu0  ;;  %s1675_s17 = sshll.u32 %s1777_s12, 4  ;;  %s1676_s17 = int_to_ptr.vmem [resolvable:$false] %s1675_s17 }
 0x446   : > { %p1678_p5 = scmp.lt.s32.totalorder %s2167_s29, %s1676_s17 }
 0x44a   : > { %v1057_v54 = vpop.f32.mrb[20].mxu0 }
 0x44b   : > { %v1064_v55 = vmul.f32 %v1554_v53, %v1057_v54  ;;  %v1418_v0 = vpop.f32.mrb[21].mxu0 }
 0x44c   : > { %v1060_v56 = vpop.f32.mrb[22].mxu0 }
 0x44d   : > { %1074 = vrot.lane.b32.xlu1 %v1064_v55, %s1776_s19  ;;  %v1419_v57 = vpop.f32.mrb[23].mxu0  ;;  %s1677_s19 = scalar_lea.vmem %s1676_s17, 256 }
 0x44e   : > { %p1679_p7 = scmp.lt.s32.totalorder %s1677_s19, %s1671_s6 }
 0x450   : > { %p1680_p9 = por %p1679_p7, %p1678_p5 }
 0x452   : > { %p1681_p0 = pnand %p1680_p9, %p1674_p3 }
 0x4af   : > { %v1067_v60 = vpop.permute.xlu0 %1066 }
 0x4b0   : > { %v1077_v63 = vsel %vm622_vm3, %v727_v62, %v1067_v60 }
 0x4b7   : > { %v1071_v61 = vpop.permute.xlu1 %1070 }
 0x4b8   : > { %v1079_v1 = vsel %vm1078_vm5, %v1077_v63, %v1071_v61 }
 0x4bf   : > { %v1075_v2 = vpop.permute.xlu1 %1074 }
 0x4c0   : > { %v1081_v3 = vsel %vm1080_vm6, %v1079_v1, %v1075_v2 }
 0x4c1   : > { %v1082_v4 = vpack.c.bf16 %v1081_v3, %v1081_v3 }
 0x4c3   : > { %1425 = vmatmul.mubr.msk.bf16.vlgmr.msra.gmra.mrb[20].mxu1 %vm440_vm1, %v1082_v4 }
 0x596   : > { %v1143_v6 = vpop.f32.mrb[20].mxu1 }
 0x597   : > { %v1144_v7 = vadd.f32 %v1312_v5, %v1143_v6  ;;  %v1426_v8 = vpop.f32.mrb[21].mxu1 }
 0x598   : > { %v1146_v9 = vpop.f32.mrb[22].mxu1 }
 0x599   : > { %v1427_v10 = vpop.f32.mrb[23].mxu1  ;;  %1149 = vst.msk [vmem:[%s405_s28] sm:$0xff] %vm440_vm1, %v1144_v7 }
 0x59a   : > { %1684 = shalt.err (!%p1681_p0)
}
 0x59b   : > { %s1685_s26 = scalar_lea.hbm %s2165_s25, 128  ;;  %s1689_s27 = scalar_lea.hbm %s2254_s22, 256 }
 0x59c   : > { %p1686_p4 = scmp.ne.s32.totalorder %s2165_s25, %s1685_s26  ;;  %p1690_p1 = scmp.lt.u32.totalorder %s2165_s25, %s2254_s22 }
 0x59d   : > { %p1691_p12 = scmp.lt.u32.totalorder %s1689_s27, %s1685_s26  ;;  %p1693_p13 = scmp.lt.u32.totalorder %s1685_s26, %s2165_s25 }
 0x59e   : > { %p1687_p2 = pnand %p1686_p4, %p1988_p10 }
 0x59f   : > { %p1692_p11 = por %p1691_p12, %p1690_p1 }
 0x5a0   : > { %p1688_p8 = pneg %p1687_p2 }
 0x5a1   : > { %p1694_p6 = por %p1693_p13, %p1692_p11 }
 0x5a3   : > { %p1695_p3 = pnand %p1694_p6, %p1688_p8 }
 0x5a5   : > { %1698 = shalt.err (!%p1695_p3)
}
 0x5a6   : > { %1442 = dma.vmem_to_hbm [thread:$0]  (%p1988_p10), %s2167_s29, 128, %s2165_s25, %s1151_s30  }
 0x5a7 PF: > { %s2255_s28 = sld [smem:[#allocation17_spill]]  ;;  %s2256_s9 = sld [smem:[#allocation19_spill]] }
 0x5a8   : > { %p2258_p7 = scmp.ge.s32.totalorder %s1761_s14, 2 }
 0x5ad   : > { %s1177_s16 = sand.u32 1, %s2255_s28   ;;  %p2257_p5 = scmp.ne.s32.totalorder %s2256_s9, 0 }
 0x5ae   : > { %s1178_s6 = scalar_lea.sflag [#allocation6], %s1177_s16 }
 0x5af   : > { %p1459_p9 = pnand %p2258_p7, %p2257_p5 }
 0x5b1   : > { %1736 = dma.done.wait (!%p1459_p9), %s1178_s6, 128  }
 0x5b2   : > { %1738 = vsyncadd (!%p1459_p9), %s1178_s6, 4294967168  ;;  %s27_s14 = sadd.s32 1, %s1761_s14   ;;  %s2259_s30 = smov %s1745_s10 }
 0x5b3   : > { %p24_p0 = scmp.ge.s32.totalorder %s27_s14, 4   ;;  %s2260_s10 = smov %s1749_s11 }
 0x5b4   : > { %s2261_s11 = smov %s2000_s15  ;;  %s2262_s12 = smov %s1757_s13 }
 0x5b5   : > { %s2263_s13 = smov %s2265_s24  ;;  %26 = sbr.rel (!%p24_p0) target bundleno = 12 (0xc), region = 118 }
 0x5bc   :  { %1183 = vsyncpa [#allocation5], 1 }
 0x5bd   :  { %1185 = vsyncpa [#allocation5 + $0x1], 1 }
 0x5be   :  { %1186 = vsyncpa [#allocation8], 1 }
 0x5bf   :  { %1187 = vsyncpa [#allocation11], 1 }
 0x5c0   :  { %1188 = vsyncpa [#allocation6], 1 }
 0x5c1   :  { %1190 = vsyncpa [#allocation6 + $0x1], 1 }

</bundles_post_ra>
